<compile_context>
chip_gen: v7x
topology: tpu7x:2x2x1
jax: 0.10.0
libtpu: 0.0.40
codegen_flags: <defaults>
</compile_context>

<pallas_src>
import functools

import jax
import jax.numpy as jnp
from jax.experimental import pallas as pl
from jax.experimental.pallas import tpu as pltpu

_LANES = 128


def _ceil_div(a, b):
    return -(-a // b)


def _round_up(a, b):
    return _ceil_div(a, b) * b


# Two-stage reductions: axis 0 first (cross-vreg VPU combine), then the
# single-vreg 128-lane tail on the XLU.  All results are (1, 1).
def _rmax(x):
    return jnp.max(jnp.max(x, axis=0, keepdims=True), axis=1, keepdims=True)


def _rmin(x):
    return jnp.min(jnp.min(x, axis=0, keepdims=True), axis=1, keepdims=True)


def _rsum(x):
    return jnp.sum(jnp.sum(x, axis=0, keepdims=True), axis=1, keepdims=True)


def _rrl_kernel(pred_ref, targ_ref, out_ref,
                l1s, mx1v, mx1t, mx2v, mx2t, mn1v, mn1t, mn2v, mn2t,
                *, n, lmbda, has_pad):
    c = pl.program_id(0)
    nc = pl.num_programs(0)

    pred = pred_ref[...].astype(jnp.float32)      # (BR, 128); tail padding == -inf
    targ = targ_ref[...].astype(jnp.float32)      # (BR, 128); tail padding == 0
    br, lanes = pred.shape
    chunk = br * lanes

    neg_inf = jnp.float32(-jnp.inf)
    pos_inf = jnp.float32(jnp.inf)
    big = jnp.int32(chunk)
    neg_one = jnp.int32(-1)

    row_i = jax.lax.broadcasted_iota(jnp.int32, pred.shape, 0)
    lane_i = jax.lax.broadcasted_iota(jnp.int32, pred.shape, 1)
    lidx = row_i * lanes + lane_i                 # local flat index in [0, chunk)

    # ---- init running state on the first chunk ------------------------------
    @pl.when(c == 0)
    def _():
        neg = jnp.full((1, 1), -jnp.inf, dtype=jnp.float32)
        pos = jnp.full((1, 1), jnp.inf, dtype=jnp.float32)
        zero = jnp.zeros((1, 1), dtype=jnp.float32)
        l1s[...] = zero
        mx1v[...] = neg
        mx2v[...] = neg
        mn1v[...] = pos
        mn2v[...] = pos
        mx1t[...] = zero
        mx2t[...] = zero
        mn1t[...] = zero
        mn2t[...] = zero

    # ---- tail-padding handling (only the last chunk can be padded) ---------
    if has_pad:
        valid = (lidx + c * chunk) < n            # mask out tail padding
        l1_terms = jnp.where(valid, jnp.abs(pred - targ), 0.0)
        p_min = jnp.where(valid, pred, pos_inf)
    else:
        l1_terms = jnp.abs(pred - targ)
        p_min = pred
    p_max = pred                                   # padding is already -inf

    # ---- per-chunk L1 partial sum -------------------------------------------
    l1s[...] += _rsum(l1_terms)

    # ---- per-chunk top-2 / bottom-2 -----------------------------------------
    # top-2: ties broken toward the smallest index (head of a stable
    # descending sort of the predicted scores).
    v_m1 = _rmax(p_max)
    sel_m1 = lidx == _rmin(jnp.where(p_max == v_m1, lidx, big))
    masked = jnp.where(sel_m1, neg_inf, p_max)
    v_m2 = _rmax(masked)
    sel_m2 = lidx == _rmin(jnp.where(masked == v_m2, lidx, big))

    # bottom-2: ties broken toward the largest index (tail of the same sort).
    v_n1 = _rmin(p_min)
    sel_n1 = lidx == _rmax(jnp.where(p_min == v_n1, lidx, neg_one))
    masked = jnp.where(sel_n1, pos_inf, p_min)
    v_n2 = _rmin(masked)
    sel_n2 = lidx == _rmax(jnp.where(masked == v_n2, lidx, neg_one))

    # target scores at those four positions (single-element selection masks).
    t_m1 = _rsum(jnp.where(sel_m1, targ, 0.0))
    t_m2 = _rsum(jnp.where(sel_m2, targ, 0.0))
    t_n1 = _rsum(jnp.where(sel_n1, targ, 0.0))
    t_n2 = _rsum(jnp.where(sel_n2, targ, 0.0))

    # ---- merge chunk candidates into the running top/bottom-2 --------------
    # Earlier chunks always hold smaller original indices, so for the max side
    # a value tie keeps the running candidate, while for the min side a value
    # tie keeps the current-chunk candidate (reproduces the stable-sort ties).
    r1v, r1t, r2v, r2t = mx1v[...], mx1t[...], mx2v[...], mx2t[...]
    keep_r1 = r1v >= v_m1
    new1v = jnp.where(keep_r1, r1v, v_m1)
    new1t = jnp.where(keep_r1, r1t, t_m1)
    a_v = jnp.where(r2v >= v_m1, r2v, v_m1)        # 2nd place if running max kept
    a_t = jnp.where(r2v >= v_m1, r2t, t_m1)
    b_v = jnp.where(r1v >= v_m2, r1v, v_m2)        # 2nd place if chunk max kept
    b_t = jnp.where(r1v >= v_m2, r1t, t_m2)
    mx1v[...] = new1v
    mx1t[...] = new1t
    mx2v[...] = jnp.where(keep_r1, a_v, b_v)
    mx2t[...] = jnp.where(keep_r1, a_t, b_t)

    r1v, r1t, r2v, r2t = mn1v[...], mn1t[...], mn2v[...], mn2t[...]
    keep_c1 = v_n1 <= r1v
    new1v = jnp.where(keep_c1, v_n1, r1v)
    new1t = jnp.where(keep_c1, t_n1, r1t)
    a_v = jnp.where(v_n2 <= r1v, v_n2, r1v)        # 2nd place if chunk min kept
    a_t = jnp.where(v_n2 <= r1v, t_n2, r1t)
    b_v = jnp.where(v_n1 <= r2v, v_n1, r2v)        # 2nd place if running min kept
    b_t = jnp.where(v_n1 <= r2v, t_n1, r2t)
    mn1v[...] = new1v
    mn1t[...] = new1t
    mn2v[...] = jnp.where(keep_c1, a_v, b_v)
    mn2t[...] = jnp.where(keep_c1, a_t, b_t)

    # ---- finalize on the last chunk -----------------------------------------
    @pl.when(c == nc - 1)
    def _():
        l1 = l1s[...] * jnp.float32(1.0 / n)
        q_max, q_max2, q_min, q_min2 = mx1v[...], mx2v[...], mn1v[...], mn2v[...]
        s_max, s_max2, s_min, s_min2 = mx1t[...], mx2t[...], mn1t[...], mn2t[...]
        d_max_min = jnp.abs(q_max - q_min)
        loss1 = jnp.maximum(0.0, jnp.abs(q_max - q_max2) - d_max_min + (s_max2 - s_min))
        loss2 = jnp.maximum(0.0, jnp.abs(q_min2 - q_min) - d_max_min + (s_max - s_min2))
        out_ref[...] = l1 + jnp.float32(lmbda) * (loss1 + loss2)


def relative_ranking_loss(predicted_scores, target_scores, lmbda=0.5,
                          block_rows=1024):
    """Pallas-TPU implementation of RelativeRankingLoss.forward (scalar f32)."""
    predicted_scores = predicted_scores.reshape(-1)
    target_scores = target_scores.reshape(-1)
    n = int(predicted_scores.shape[0])
    if n < 2:
        raise ValueError("RelativeRankingLoss needs at least 2 scores")
    block_rows = _round_up(int(block_rows), 8)

    # Lane-dense (rows, 128) layout; rows padded to a multiple of 8 sublanes,
    # and to a multiple of block_rows when the input spans several grid steps.
    rows = _round_up(_ceil_div(n, _LANES), 8)
    if rows > block_rows:
        rows = _round_up(rows, block_rows)
        br = block_rows
    else:
        br = rows
    padded = rows * _LANES
    pad = padded - n

    if pad:
        # pred padding = -inf (never wins the max side); the min side and the
        # L1 term mask padding by index inside the kernel.
        pred_flat = jnp.concatenate(
            [predicted_scores,
             jnp.full((pad,), -jnp.inf, dtype=predicted_scores.dtype)])
        targ_flat = jnp.concatenate(
            [target_scores, jnp.zeros((pad,), dtype=target_scores.dtype)])
    else:
        pred_flat, targ_flat = predicted_scores, target_scores
    pred2d = pred_flat.reshape(rows, _LANES)
    targ2d = targ_flat.reshape(rows, _LANES)

    kernel = functools.partial(_rrl_kernel, n=n, lmbda=float(lmbda),
                               has_pad=bool(pad))
    out = pl.pallas_call(
        kernel,
        out_shape=jax.ShapeDtypeStruct((1, 1), jnp.float32),
        grid_spec=pltpu.PrefetchScalarGridSpec(
            num_scalar_prefetch=0,
            grid=(rows // br,),
            in_specs=[pl.BlockSpec((br, _LANES), lambda c: (c, 0)),
                      pl.BlockSpec((br, _LANES), lambda c: (c, 0))],
            out_specs=pl.BlockSpec((1, 1), lambda c: (0, 0)),
            scratch_shapes=[pltpu.VMEM((1, 1), jnp.float32) for _ in range(9)],
        ),
        compiler_params=pltpu.CompilerParams(
            dimension_semantics=("arbitrary",)),
    )(pred2d, targ2d)
    return out[0, 0]


def _reference(pred, targ, lmbda=0.5):
    """Pure-JAX mirror of the PyTorch forward (uses an actual stable sort)."""
    pred = pred.astype(jnp.float32)
    targ = targ.astype(jnp.float32)
    l1 = jnp.mean(jnp.abs(pred - targ))
    order = jnp.argsort(-pred)          # stable, descending by predicted score
    sp = pred[order]
    st = targ[order]
    q_max, q_max2, q_min, q_min2 = sp[0], sp[1], sp[-1], sp[-2]
    s_max, s_max2, s_min, s_min2 = st[0], st[1], st[-1], st[-2]
    d = lambda a, b: jnp.abs(a - b)
    loss1 = jnp.maximum(0.0, d(q_max, q_max2) - d(q_max, q_min) + (s_max2 - s_min))
    loss2 = jnp.maximum(0.0, d(q_min2, q_min) - d(q_max, q_min) + (s_max - s_min2))
    return l1 + lmbda * (loss1 + loss2)


if __name__ == "__main__":
    key = jax.random.PRNGKey(0)

    # Case 1: tiny score vector (matches the module's typical per-batch use).
    k1, k2 = jax.random.split(key)
    n = 8
    pred = jax.random.normal(k1, (n,), dtype=jnp.float32)
    targ = jax.random.normal(k2, (n,), dtype=jnp.float32)
    loss = jax.block_until_ready(relative_ranking_loss(pred, targ, lmbda=0.5))
    ref = _reference(pred, targ, lmbda=0.5)
    assert jnp.allclose(loss, ref, rtol=1e-5, atol=1e-5), (loss, ref)

    # Case 2: padded + multi-chunk path (small block_rows so the grid
    # accumulation is exercised without needing a huge input).
    k3, k4 = jax.random.split(k1)
    n = 2000
    pred = jax.random.normal(k3, (n,), dtype=jnp.float32)
    targ = jax.random.normal(k4, (n,), dtype=jnp.float32)
    loss = jax.block_until_ready(
        relative_ranking_loss(pred, targ, lmbda=0.5, block_rows=8))
    ref = _reference(pred, targ, lmbda=0.5)
    assert jnp.allclose(loss, ref, rtol=1e-5, atol=1e-5), (loss, ref)

    # Case 3: heavy ties across chunk boundaries (exercises the stable-sort
    # tie-break logic, including the cross-chunk merge).
    k5, k6 = jax.random.split(k3)
    n = 600
    pred = jnp.round(jax.random.normal(k5, (n,), dtype=jnp.float32) * 2.0) / 2.0
    targ = jax.random.normal(k6, (n,), dtype=jnp.float32)
    loss = jax.block_until_ready(
        relative_ranking_loss(pred, targ, lmbda=0.5, block_rows=8))
    ref = _reference(pred, targ, lmbda=0.5)
    assert jnp.allclose(loss, ref, rtol=1e-5, atol=1e-5), (loss, ref)

    print("KERNEL_OK")
</pallas_src>

<mosaic_0001>
module attributes {stable_mosaic.version = 11 : i64} {
  func.func @_rrl_kernel(%arg0: i32, %arg1: memref<8x128xf32, #tpu.memory_space<vmem>>, %arg2: memref<8x128xf32, #tpu.memory_space<vmem>>, %arg3: memref<1x1xf32, #tpu.memory_space<vmem>>, %arg4: memref<1x1xf32, #tpu.memory_space<vmem>>, %arg5: memref<1x1xf32, #tpu.memory_space<vmem>>, %arg6: memref<1x1xf32, #tpu.memory_space<vmem>>, %arg7: memref<1x1xf32, #tpu.memory_space<vmem>>, %arg8: memref<1x1xf32, #tpu.memory_space<vmem>>, %arg9: memref<1x1xf32, #tpu.memory_space<vmem>>, %arg10: memref<1x1xf32, #tpu.memory_space<vmem>>, %arg11: memref<1x1xf32, #tpu.memory_space<vmem>>, %arg12: memref<1x1xf32, #tpu.memory_space<vmem>>) attributes {dimension_semantics = [#tpu.dimension_semantics<arbitrary>], iteration_bounds = array<i64: 1>, scalar_prefetch = 0 : i64, scratch_operands = 9 : i64, tpu.core_type = #tpu.core_type<tc>, window_params = [{transform_indices = @transform_0, window_bounds = array<i64: 8, 128>}, {transform_indices = @transform_1, window_bounds = array<i64: 8, 128>}, {pipeline_mode = #tpu.pipeline_mode<synchronous>, transform_indices = @transform_2, window_bounds = array<i64: 1, 1>}]} {
    %c0 = arith.constant 0 : index
    %c0_0 = arith.constant 0 : index
    %0 = vector.load %arg1[%c0, %c0_0] : memref<8x128xf32, #tpu.memory_space<vmem>>, vector<8x128xf32>
    %c0_1 = arith.constant 0 : index
    %c0_2 = arith.constant 0 : index
    %1 = vector.load %arg2[%c0_1, %c0_2] : memref<8x128xf32, #tpu.memory_space<vmem>>, vector<8x128xf32>
    %2 = tpu.iota {dimensions = array<i32: 0>} : vector<8x128xi32>
    %3 = tpu.iota {dimensions = array<i32: 1>} : vector<8x128xi32>
    %c128_i32 = arith.constant 128 : i32
    %4 = vector.broadcast %c128_i32 : i32 to vector<8x128xi32>
    %5 = arith.muli %2, %4 : vector<8x128xi32>
    %6 = arith.addi %5, %3 : vector<8x128xi32>
    %c0_i32 = arith.constant 0 : i32
    %7 = arith.cmpi eq, %arg0, %c0_i32 : i32
    %8 = arith.extui %7 : i1 to i32
    %c0_i32_3 = arith.constant 0 : i32
    %9 = arith.cmpi ne, %8, %c0_i32_3 : i32
    scf.if %9 {
      %cst_78 = arith.constant 0xFF800000 : f32
      %157 = vector.broadcast %cst_78 : f32 to vector<1x1xf32>
      %cst_79 = arith.constant 0x7F800000 : f32
      %158 = vector.broadcast %cst_79 : f32 to vector<1x1xf32>
      %cst_80 = arith.constant 0.000000e+00 : f32
      %159 = vector.broadcast %cst_80 : f32 to vector<1x1xf32>
      %c0_81 = arith.constant 0 : index
      %c0_82 = arith.constant 0 : index
      %160 = vector.load %arg4[%c0_81, %c0_82] : memref<1x1xf32, #tpu.memory_space<vmem>>, vector<1x1xf32>
      tpu.vector_store %arg4[%c0_81, %c0_82], %159 {strides = array<i32>} : memref<1x1xf32, #tpu.memory_space<vmem>>, vector<1x1xf32>,
      %c0_83 = arith.constant 0 : index
      %c0_84 = arith.constant 0 : index
      %161 = vector.load %arg5[%c0_83, %c0_84] : memref<1x1xf32, #tpu.memory_space<vmem>>, vector<1x1xf32>
      tpu.vector_store %arg5[%c0_83, %c0_84], %157 {strides = array<i32>} : memref<1x1xf32, #tpu.memory_space<vmem>>, vector<1x1xf32>,
      %c0_85 = arith.constant 0 : index
      %c0_86 = arith.constant 0 : index
      %162 = vector.load %arg7[%c0_85, %c0_86] : memref<1x1xf32, #tpu.memory_space<vmem>>, vector<1x1xf32>
      tpu.vector_store %arg7[%c0_85, %c0_86], %157 {strides = array<i32>} : memref<1x1xf32, #tpu.memory_space<vmem>>, vector<1x1xf32>,
      %c0_87 = arith.constant 0 : index
      %c0_88 = arith.constant 0 : index
      %163 = vector.load %arg9[%c0_87, %c0_88] : memref<1x1xf32, #tpu.memory_space<vmem>>, vector<1x1xf32>
      tpu.vector_store %arg9[%c0_87, %c0_88], %158 {strides = array<i32>} : memref<1x1xf32, #tpu.memory_space<vmem>>, vector<1x1xf32>,
      %c0_89 = arith.constant 0 : index
      %c0_90 = arith.constant 0 : index
      %164 = vector.load %arg11[%c0_89, %c0_90] : memref<1x1xf32, #tpu.memory_space<vmem>>, vector<1x1xf32>
      tpu.vector_store %arg11[%c0_89, %c0_90], %158 {strides = array<i32>} : memref<1x1xf32, #tpu.memory_space<vmem>>, vector<1x1xf32>,
      %c0_91 = arith.constant 0 : index
      %c0_92 = arith.constant 0 : index
      %165 = vector.load %arg6[%c0_91, %c0_92] : memref<1x1xf32, #tpu.memory_space<vmem>>, vector<1x1xf32>
      tpu.vector_store %arg6[%c0_91, %c0_92], %159 {strides = array<i32>} : memref<1x1xf32, #tpu.memory_space<vmem>>, vector<1x1xf32>,
      %c0_93 = arith.constant 0 : index
      %c0_94 = arith.constant 0 : index
      %166 = vector.load %arg8[%c0_93, %c0_94] : memref<1x1xf32, #tpu.memory_space<vmem>>, vector<1x1xf32>
      tpu.vector_store %arg8[%c0_93, %c0_94], %159 {strides = array<i32>} : memref<1x1xf32, #tpu.memory_space<vmem>>, vector<1x1xf32>,
      %c0_95 = arith.constant 0 : index
      %c0_96 = arith.constant 0 : index
      %167 = vector.load %arg10[%c0_95, %c0_96] : memref<1x1xf32, #tpu.memory_space<vmem>>, vector<1x1xf32>
      tpu.vector_store %arg10[%c0_95, %c0_96], %159 {strides = array<i32>} : memref<1x1xf32, #tpu.memory_space<vmem>>, vector<1x1xf32>,
      %c0_97 = arith.constant 0 : index
      %c0_98 = arith.constant 0 : index
      %168 = vector.load %arg12[%c0_97, %c0_98] : memref<1x1xf32, #tpu.memory_space<vmem>>, vector<1x1xf32>
      tpu.vector_store %arg12[%c0_97, %c0_98], %159 {strides = array<i32>} : memref<1x1xf32, #tpu.memory_space<vmem>>, vector<1x1xf32>,
    } else {
    }
    %c1024_i32 = arith.constant 1024 : i32
    %10 = arith.muli %arg0, %c1024_i32 : i32
    %11 = vector.broadcast %10 : i32 to vector<8x128xi32>
    %12 = arith.addi %6, %11 : vector<8x128xi32>
    %c8_i32 = arith.constant 8 : i32
    %13 = vector.broadcast %c8_i32 : i32 to vector<8x128xi32>
    %14 = arith.cmpi slt, %12, %13 : vector<8x128xi32>
    %15 = arith.subf %0, %1 : vector<8x128xf32>
    %16 = math.absf %15 : vector<8x128xf32>
    %cst = arith.constant 0.000000e+00 : f32
    %17 = vector.broadcast %cst : f32 to vector<8x128xf32>
    %18 = arith.select %14, %16, %17 : vector<8x128xi1>, vector<8x128xf32>
    %cst_4 = arith.constant 0x7F800000 : f32
    %19 = vector.broadcast %cst_4 : f32 to vector<8x128xf32>
    %20 = arith.select %14, %0, %19 : vector<8x128xi1>, vector<8x128xf32>
    %c0_5 = arith.constant 0 : index
    %c0_6 = arith.constant 0 : index
    %21 = vector.load %arg4[%c0_5, %c0_6] : memref<1x1xf32, #tpu.memory_space<vmem>>, vector<1x1xf32>
    %cst_7 = arith.constant dense<0.000000e+00> : vector<128xf32>
    %22 = vector.multi_reduction <add>, %18, %cst_7 [0] : vector<8x128xf32> to vector<128xf32>
    %23 = vector.shape_cast %22 : vector<128xf32> to vector<1x128xf32>
    %cst_8 = arith.constant dense<0.000000e+00> : vector<1xf32>
    %24 = vector.multi_reduction <add>, %23, %cst_8 [1] : vector<1x128xf32> to vector<1xf32>
    %25 = vector.shape_cast %24 : vector<1xf32> to vector<1x1xf32>
    %26 = arith.addf %21, %25 : vector<1x1xf32>
    %c0_9 = arith.constant 0 : index
    %c0_10 = arith.constant 0 : index
    %27 = vector.load %arg4[%c0_9, %c0_10] : memref<1x1xf32, #tpu.memory_space<vmem>>, vector<1x1xf32>
    tpu.vector_store %arg4[%c0_9, %c0_10], %26 {strides = array<i32>} : memref<1x1xf32, #tpu.memory_space<vmem>>, vector<1x1xf32>,
    %cst_11 = arith.constant dense<0xFF800000> : vector<128xf32>
    %28 = vector.multi_reduction <maximumf>, %0, %cst_11 [0] : vector<8x128xf32> to vector<128xf32>
    %29 = vector.shape_cast %28 : vector<128xf32> to vector<1x128xf32>
    %cst_12 = arith.constant dense<0xFF800000> : vector<1xf32>
    %30 = vector.multi_reduction <maximumf>, %29, %cst_12 [1] : vector<1x128xf32> to vector<1xf32>
    %31 = vector.shape_cast %30 : vector<1xf32> to vector<1x1xf32>
    %32 = vector.broadcast %31 : vector<1x1xf32> to vector<8x128xf32>
    %33 = arith.cmpf oeq, %0, %32 : vector<8x128xf32>
    %c1024_i32_13 = arith.constant 1024 : i32
    %34 = vector.broadcast %c1024_i32_13 : i32 to vector<8x128xi32>
    %35 = arith.select %33, %6, %34 : vector<8x128xi1>, vector<8x128xi32>
    %cst_14 = arith.constant dense<2147483647> : vector<128xi32>
    %36 = vector.multi_reduction <minsi>, %35, %cst_14 [0] : vector<8x128xi32> to vector<128xi32>
    %37 = vector.shape_cast %36 : vector<128xi32> to vector<1x128xi32>
    %cst_15 = arith.constant dense<2147483647> : vector<1xi32>
    %38 = vector.multi_reduction <minsi>, %37, %cst_15 [1] : vector<1x128xi32> to vector<1xi32>
    %39 = vector.shape_cast %38 : vector<1xi32> to vector<1x1xi32>
    %40 = vector.broadcast %39 : vector<1x1xi32> to vector<8x128xi32>
    %41 = arith.cmpi eq, %6, %40 : vector<8x128xi32>
    %cst_16 = arith.constant 0xFF800000 : f32
    %42 = vector.broadcast %cst_16 : f32 to vector<8x128xf32>
    %43 = arith.select %41, %42, %0 : vector<8x128xi1>, vector<8x128xf32>
    %cst_17 = arith.constant dense<0xFF800000> : vector<128xf32>
    %44 = vector.multi_reduction <maximumf>, %43, %cst_17 [0] : vector<8x128xf32> to vector<128xf32>
    %45 = vector.shape_cast %44 : vector<128xf32> to vector<1x128xf32>
    %cst_18 = arith.constant dense<0xFF800000> : vector<1xf32>
    %46 = vector.multi_reduction <maximumf>, %45, %cst_18 [1] : vector<1x128xf32> to vector<1xf32>
    %47 = vector.shape_cast %46 : vector<1xf32> to vector<1x1xf32>
    %48 = vector.broadcast %47 : vector<1x1xf32> to vector<8x128xf32>
    %49 = arith.cmpf oeq, %43, %48 : vector<8x128xf32>
    %c1024_i32_19 = arith.constant 1024 : i32
    %50 = vector.broadcast %c1024_i32_19 : i32 to vector<8x128xi32>
    %51 = arith.select %49, %6, %50 : vector<8x128xi1>, vector<8x128xi32>
    %cst_20 = arith.constant dense<2147483647> : vector<128xi32>
    %52 = vector.multi_reduction <minsi>, %51, %cst_20 [0] : vector<8x128xi32> to vector<128xi32>
    %53 = vector.shape_cast %52 : vector<128xi32> to vector<1x128xi32>
    %cst_21 = arith.constant dense<2147483647> : vector<1xi32>
    %54 = vector.multi_reduction <minsi>, %53, %cst_21 [1] : vector<1x128xi32> to vector<1xi32>
    %55 = vector.shape_cast %54 : vector<1xi32> to vector<1x1xi32>
    %56 = vector.broadcast %55 : vector<1x1xi32> to vector<8x128xi32>
    %57 = arith.cmpi eq, %6, %56 : vector<8x128xi32>
    %cst_22 = arith.constant dense<0x7F800000> : vector<128xf32>
    %58 = vector.multi_reduction <minimumf>, %20, %cst_22 [0] : vector<8x128xf32> to vector<128xf32>
    %59 = vector.shape_cast %58 : vector<128xf32> to vector<1x128xf32>
    %cst_23 = arith.constant dense<0x7F800000> : vector<1xf32>
    %60 = vector.multi_reduction <minimumf>, %59, %cst_23 [1] : vector<1x128xf32> to vector<1xf32>
    %61 = vector.shape_cast %60 : vector<1xf32> to vector<1x1xf32>
    %62 = vector.broadcast %61 : vector<1x1xf32> to vector<8x128xf32>
    %63 = arith.cmpf oeq, %20, %62 : vector<8x128xf32>
    %c-1_i32 = arith.constant -1 : i32
    %64 = vector.broadcast %c-1_i32 : i32 to vector<8x128xi32>
    %65 = arith.select %63, %6, %64 : vector<8x128xi1>, vector<8x128xi32>
    %cst_24 = arith.constant dense<-2147483648> : vector<128xi32>
    %66 = vector.multi_reduction <maxsi>, %65, %cst_24 [0] : vector<8x128xi32> to vector<128xi32>
    %67 = vector.shape_cast %66 : vector<128xi32> to vector<1x128xi32>
    %cst_25 = arith.constant dense<-2147483648> : vector<1xi32>
    %68 = vector.multi_reduction <maxsi>, %67, %cst_25 [1] : vector<1x128xi32> to vector<1xi32>
    %69 = vector.shape_cast %68 : vector<1xi32> to vector<1x1xi32>
    %70 = vector.broadcast %69 : vector<1x1xi32> to vector<8x128xi32>
    %71 = arith.cmpi eq, %6, %70 : vector<8x128xi32>
    %cst_26 = arith.constant 0x7F800000 : f32
    %72 = vector.broadcast %cst_26 : f32 to vector<8x128xf32>
    %73 = arith.select %71, %72, %20 : vector<8x128xi1>, vector<8x128xf32>
    %cst_27 = arith.constant dense<0x7F800000> : vector<128xf32>
    %74 = vector.multi_reduction <minimumf>, %73, %cst_27 [0] : vector<8x128xf32> to vector<128xf32>
    %75 = vector.shape_cast %74 : vector<128xf32> to vector<1x128xf32>
    %cst_28 = arith.constant dense<0x7F800000> : vector<1xf32>
    %76 = vector.multi_reduction <minimumf>, %75, %cst_28 [1] : vector<1x128xf32> to vector<1xf32>
    %77 = vector.shape_cast %76 : vector<1xf32> to vector<1x1xf32>
    %78 = vector.broadcast %77 : vector<1x1xf32> to vector<8x128xf32>
    %79 = arith.cmpf oeq, %73, %78 : vector<8x128xf32>
    %c-1_i32_29 = arith.constant -1 : i32
    %80 = vector.broadcast %c-1_i32_29 : i32 to vector<8x128xi32>
    %81 = arith.select %79, %6, %80 : vector<8x128xi1>, vector<8x128xi32>
    %cst_30 = arith.constant dense<-2147483648> : vector<128xi32>
    %82 = vector.multi_reduction <maxsi>, %81, %cst_30 [0] : vector<8x128xi32> to vector<128xi32>
    %83 = vector.shape_cast %82 : vector<128xi32> to vector<1x128xi32>
    %cst_31 = arith.constant dense<-2147483648> : vector<1xi32>
    %84 = vector.multi_reduction <maxsi>, %83, %cst_31 [1] : vector<1x128xi32> to vector<1xi32>
    %85 = vector.shape_cast %84 : vector<1xi32> to vector<1x1xi32>
    %86 = vector.broadcast %85 : vector<1x1xi32> to vector<8x128xi32>
    %87 = arith.cmpi eq, %6, %86 : vector<8x128xi32>
    %cst_32 = arith.constant 0.000000e+00 : f32
    %88 = vector.broadcast %cst_32 : f32 to vector<8x128xf32>
    %89 = arith.select %41, %1, %88 : vector<8x128xi1>, vector<8x128xf32>
    %cst_33 = arith.constant dense<0.000000e+00> : vector<128xf32>
    %90 = vector.multi_reduction <add>, %89, %cst_33 [0] : vector<8x128xf32> to vector<128xf32>
    %91 = vector.shape_cast %90 : vector<128xf32> to vector<1x128xf32>
    %cst_34 = arith.constant dense<0.000000e+00> : vector<1xf32>
    %92 = vector.multi_reduction <add>, %91, %cst_34 [1] : vector<1x128xf32> to vector<1xf32>
    %93 = vector.shape_cast %92 : vector<1xf32> to vector<1x1xf32>
    %cst_35 = arith.constant 0.000000e+00 : f32
    %94 = vector.broadcast %cst_35 : f32 to vector<8x128xf32>
    %95 = arith.select %57, %1, %94 : vector<8x128xi1>, vector<8x128xf32>
    %cst_36 = arith.constant dense<0.000000e+00> : vector<128xf32>
    %96 = vector.multi_reduction <add>, %95, %cst_36 [0] : vector<8x128xf32> to vector<128xf32>
    %97 = vector.shape_cast %96 : vector<128xf32> to vector<1x128xf32>
    %cst_37 = arith.constant dense<0.000000e+00> : vector<1xf32>
    %98 = vector.multi_reduction <add>, %97, %cst_37 [1] : vector<1x128xf32> to vector<1xf32>
    %99 = vector.shape_cast %98 : vector<1xf32> to vector<1x1xf32>
    %cst_38 = arith.constant 0.000000e+00 : f32
    %100 = vector.broadcast %cst_38 : f32 to vector<8x128xf32>
    %101 = arith.select %71, %1, %100 : vector<8x128xi1>, vector<8x128xf32>
    %cst_39 = arith.constant dense<0.000000e+00> : vector<128xf32>
    %102 = vector.multi_reduction <add>, %101, %cst_39 [0] : vector<8x128xf32> to vector<128xf32>
    %103 = vector.shape_cast %102 : vector<128xf32> to vector<1x128xf32>
    %cst_40 = arith.constant dense<0.000000e+00> : vector<1xf32>
    %104 = vector.multi_reduction <add>, %103, %cst_40 [1] : vector<1x128xf32> to vector<1xf32>
    %105 = vector.shape_cast %104 : vector<1xf32> to vector<1x1xf32>
    %cst_41 = arith.constant 0.000000e+00 : f32
    %106 = vector.broadcast %cst_41 : f32 to vector<8x128xf32>
    %107 = arith.select %87, %1, %106 : vector<8x128xi1>, vector<8x128xf32>
    %cst_42 = arith.constant dense<0.000000e+00> : vector<128xf32>
    %108 = vector.multi_reduction <add>, %107, %cst_42 [0] : vector<8x128xf32> to vector<128xf32>
    %109 = vector.shape_cast %108 : vector<128xf32> to vector<1x128xf32>
    %cst_43 = arith.constant dense<0.000000e+00> : vector<1xf32>
    %110 = vector.multi_reduction <add>, %109, %cst_43 [1] : vector<1x128xf32> to vector<1xf32>
    %111 = vector.shape_cast %110 : vector<1xf32> to vector<1x1xf32>
    %c0_44 = arith.constant 0 : index
    %c0_45 = arith.constant 0 : index
    %112 = vector.load %arg5[%c0_44, %c0_45] : memref<1x1xf32, #tpu.memory_space<vmem>>, vector<1x1xf32>
    %c0_46 = arith.constant 0 : index
    %c0_47 = arith.constant 0 : index
    %113 = vector.load %arg6[%c0_46, %c0_47] : memref<1x1xf32, #tpu.memory_space<vmem>>, vector<1x1xf32>
    %c0_48 = arith.constant 0 : index
    %c0_49 = arith.constant 0 : index
    %114 = vector.load %arg7[%c0_48, %c0_49] : memref<1x1xf32, #tpu.memory_space<vmem>>, vector<1x1xf32>
    %c0_50 = arith.constant 0 : index
    %c0_51 = arith.constant 0 : index
    %115 = vector.load %arg8[%c0_50, %c0_51] : memref<1x1xf32, #tpu.memory_space<vmem>>, vector<1x1xf32>
    %116 = arith.cmpf oge, %112, %31 : vector<1x1xf32>
    %117 = arith.select %116, %112, %31 : vector<1x1xi1>, vector<1x1xf32>
    %118 = arith.select %116, %113, %93 : vector<1x1xi1>, vector<1x1xf32>
    %119 = arith.cmpf oge, %114, %31 : vector<1x1xf32>
    %120 = arith.select %119, %114, %31 : vector<1x1xi1>, vector<1x1xf32>
    %121 = arith.cmpf oge, %114, %31 : vector<1x1xf32>
    %122 = arith.select %121, %115, %93 : vector<1x1xi1>, vector<1x1xf32>
    %123 = arith.cmpf oge, %112, %47 : vector<1x1xf32>
    %124 = arith.select %123, %112, %47 : vector<1x1xi1>, vector<1x1xf32>
    %125 = arith.cmpf oge, %112, %47 : vector<1x1xf32>
    %126 = arith.select %125, %113, %99 : vector<1x1xi1>, vector<1x1xf32>
    %c0_52 = arith.constant 0 : index
    %c0_53 = arith.constant 0 : index
    %127 = vector.load %arg5[%c0_52, %c0_53] : memref<1x1xf32, #tpu.memory_space<vmem>>, vector<1x1xf32>
    tpu.vector_store %arg5[%c0_52, %c0_53], %117 {strides = array<i32>} : memref<1x1xf32, #tpu.memory_space<vmem>>, vector<1x1xf32>,
    %c0_54 = arith.constant 0 : index
    %c0_55 = arith.constant 0 : index
    %128 = vector.load %arg6[%c0_54, %c0_55] : memref<1x1xf32, #tpu.memory_space<vmem>>, vector<1x1xf32>
    tpu.vector_store %arg6[%c0_54, %c0_55], %118 {strides = array<i32>} : memref<1x1xf32, #tpu.memory_space<vmem>>, vector<1x1xf32>,
    %129 = arith.select %116, %120, %124 : vector<1x1xi1>, vector<1x1xf32>
    %c0_56 = arith.constant 0 : index
    %c0_57 = arith.constant 0 : index
    %130 = vector.load %arg7[%c0_56, %c0_57] : memref<1x1xf32, #tpu.memory_space<vmem>>, vector<1x1xf32>
    tpu.vector_store %arg7[%c0_56, %c0_57], %129 {strides = array<i32>} : memref<1x1xf32, #tpu.memory_space<vmem>>, vector<1x1xf32>,
    %131 = arith.select %116, %122, %126 : vector<1x1xi1>, vector<1x1xf32>
    %c0_58 = arith.constant 0 : index
    %c0_59 = arith.constant 0 : index
    %132 = vector.load %arg8[%c0_58, %c0_59] : memref<1x1xf32, #tpu.memory_space<vmem>>, vector<1x1xf32>
    tpu.vector_store %arg8[%c0_58, %c0_59], %131 {strides = array<i32>} : memref<1x1xf32, #tpu.memory_space<vmem>>, vector<1x1xf32>,
    %c0_60 = arith.constant 0 : index
    %c0_61 = arith.constant 0 : index
    %133 = vector.load %arg9[%c0_60, %c0_61] : memref<1x1xf32, #tpu.memory_space<vmem>>, vector<1x1xf32>
    %c0_62 = arith.constant 0 : index
    %c0_63 = arith.constant 0 : index
    %134 = vector.load %arg10[%c0_62, %c0_63] : memref<1x1xf32, #tpu.memory_space<vmem>>, vector<1x1xf32>
    %c0_64 = arith.constant 0 : index
    %c0_65 = arith.constant 0 : index
    %135 = vector.load %arg11[%c0_64, %c0_65] : memref<1x1xf32, #tpu.memory_space<vmem>>, vector<1x1xf32>
    %c0_66 = arith.constant 0 : index
    %c0_67 = arith.constant 0 : index
    %136 = vector.load %arg12[%c0_66, %c0_67] : memref<1x1xf32, #tpu.memory_space<vmem>>, vector<1x1xf32>
    %137 = arith.cmpf ole, %61, %133 : vector<1x1xf32>
    %138 = arith.select %137, %61, %133 : vector<1x1xi1>, vector<1x1xf32>
    %139 = arith.select %137, %105, %134 : vector<1x1xi1>, vector<1x1xf32>
    %140 = arith.cmpf ole, %77, %133 : vector<1x1xf32>
    %141 = arith.select %140, %77, %133 : vector<1x1xi1>, vector<1x1xf32>
    %142 = arith.cmpf ole, %77, %133 : vector<1x1xf32>
    %143 = arith.select %142, %111, %134 : vector<1x1xi1>, vector<1x1xf32>
    %144 = arith.cmpf ole, %61, %135 : vector<1x1xf32>
    %145 = arith.select %144, %61, %135 : vector<1x1xi1>, vector<1x1xf32>
    %146 = arith.cmpf ole, %61, %135 : vector<1x1xf32>
    %147 = arith.select %146, %105, %136 : vector<1x1xi1>, vector<1x1xf32>
    %c0_68 = arith.constant 0 : index
    %c0_69 = arith.constant 0 : index
    %148 = vector.load %arg9[%c0_68, %c0_69] : memref<1x1xf32, #tpu.memory_space<vmem>>, vector<1x1xf32>
    tpu.vector_store %arg9[%c0_68, %c0_69], %138 {strides = array<i32>} : memref<1x1xf32, #tpu.memory_space<vmem>>, vector<1x1xf32>,
    %c0_70 = arith.constant 0 : index
    %c0_71 = arith.constant 0 : index
    %149 = vector.load %arg10[%c0_70, %c0_71] : memref<1x1xf32, #tpu.memory_space<vmem>>, vector<1x1xf32>
    tpu.vector_store %arg10[%c0_70, %c0_71], %139 {strides = array<i32>} : memref<1x1xf32, #tpu.memory_space<vmem>>, vector<1x1xf32>,
    %150 = arith.select %137, %141, %145 : vector<1x1xi1>, vector<1x1xf32>
    %c0_72 = arith.constant 0 : index
    %c0_73 = arith.constant 0 : index
    %151 = vector.load %arg11[%c0_72, %c0_73] : memref<1x1xf32, #tpu.memory_space<vmem>>, vector<1x1xf32>
    tpu.vector_store %arg11[%c0_72, %c0_73], %150 {strides = array<i32>} : memref<1x1xf32, #tpu.memory_space<vmem>>, vector<1x1xf32>,
    %152 = arith.select %137, %143, %147 : vector<1x1xi1>, vector<1x1xf32>
    %c0_74 = arith.constant 0 : index
    %c0_75 = arith.constant 0 : index
    %153 = vector.load %arg12[%c0_74, %c0_75] : memref<1x1xf32, #tpu.memory_space<vmem>>, vector<1x1xf32>
    tpu.vector_store %arg12[%c0_74, %c0_75], %152 {strides = array<i32>} : memref<1x1xf32, #tpu.memory_space<vmem>>, vector<1x1xf32>,
    %c0_i32_76 = arith.constant 0 : i32
    %154 = arith.cmpi eq, %arg0, %c0_i32_76 : i32
    %155 = arith.extui %154 : i1 to i32
    %c0_i32_77 = arith.constant 0 : i32
    %156 = arith.cmpi ne, %155, %c0_i32_77 : i32
    scf.if %156 {
      %c0_78 = arith.constant 0 : index
      %c0_79 = arith.constant 0 : index
      %157 = vector.load %arg4[%c0_78, %c0_79] : memref<1x1xf32, #tpu.memory_space<vmem>>, vector<1x1xf32>
      %cst_80 = arith.constant 1.250000e-01 : f32
      %158 = vector.broadcast %cst_80 : f32 to vector<1x1xf32>
      %159 = arith.mulf %157, %158 : vector<1x1xf32>
      %c0_81 = arith.constant 0 : index
      %c0_82 = arith.constant 0 : index
      %160 = vector.load %arg5[%c0_81, %c0_82] : memref<1x1xf32, #tpu.memory_space<vmem>>, vector<1x1xf32>
      %c0_83 = arith.constant 0 : index
      %c0_84 = arith.constant 0 : index
      %161 = vector.load %arg7[%c0_83, %c0_84] : memref<1x1xf32, #tpu.memory_space<vmem>>, vector<1x1xf32>
      %c0_85 = arith.constant 0 : index
      %c0_86 = arith.constant 0 : index
      %162 = vector.load %arg9[%c0_85, %c0_86] : memref<1x1xf32, #tpu.memory_space<vmem>>, vector<1x1xf32>
      %c0_87 = arith.constant 0 : index
      %c0_88 = arith.constant 0 : index
      %163 = vector.load %arg11[%c0_87, %c0_88] : memref<1x1xf32, #tpu.memory_space<vmem>>, vector<1x1xf32>
      %c0_89 = arith.constant 0 : index
      %c0_90 = arith.constant 0 : index
      %164 = vector.load %arg6[%c0_89, %c0_90] : memref<1x1xf32, #tpu.memory_space<vmem>>, vector<1x1xf32>
      %c0_91 = arith.constant 0 : index
      %c0_92 = arith.constant 0 : index
      %165 = vector.load %arg8[%c0_91, %c0_92] : memref<1x1xf32, #tpu.memory_space<vmem>>, vector<1x1xf32>
      %c0_93 = arith.constant 0 : index
      %c0_94 = arith.constant 0 : index
      %166 = vector.load %arg10[%c0_93, %c0_94] : memref<1x1xf32, #tpu.memory_space<vmem>>, vector<1x1xf32>
      %c0_95 = arith.constant 0 : index
      %c0_96 = arith.constant 0 : index
      %167 = vector.load %arg12[%c0_95, %c0_96] : memref<1x1xf32, #tpu.memory_space<vmem>>, vector<1x1xf32>
      %168 = arith.subf %160, %162 : vector<1x1xf32>
      %169 = math.absf %168 : vector<1x1xf32>
      %170 = arith.subf %160, %161 : vector<1x1xf32>
      %171 = math.absf %170 : vector<1x1xf32>
      %172 = arith.subf %171, %169 : vector<1x1xf32>
      %173 = arith.subf %165, %166 : vector<1x1xf32>
      %174 = arith.addf %172, %173 : vector<1x1xf32>
      %cst_97 = arith.constant 0.000000e+00 : f32
      %175 = vector.broadcast %cst_97 : f32 to vector<1x1xf32>
      %176 = arith.maximumf %175, %174 : vector<1x1xf32>
      %177 = arith.subf %163, %162 : vector<1x1xf32>
      %178 = math.absf %177 : vector<1x1xf32>
      %179 = arith.subf %178, %169 : vector<1x1xf32>
      %180 = arith.subf %164, %167 : vector<1x1xf32>
      %181 = arith.addf %179, %180 : vector<1x1xf32>
      %cst_98 = arith.constant 0.000000e+00 : f32
      %182 = vector.broadcast %cst_98 : f32 to vector<1x1xf32>
      %183 = arith.maximumf %182, %181 : vector<1x1xf32>
      %184 = arith.addf %176, %183 : vector<1x1xf32>
      %cst_99 = arith.constant 5.000000e-01 : f32
      %185 = vector.broadcast %cst_99 : f32 to vector<1x1xf32>
      %186 = arith.mulf %185, %184 : vector<1x1xf32>
      %187 = arith.addf %159, %186 : vector<1x1xf32>
      %c0_100 = arith.constant 0 : index
      %c0_101 = arith.constant 0 : index
      %188 = vector.load %arg3[%c0_100, %c0_101] : memref<1x1xf32, #tpu.memory_space<vmem>>, vector<1x1xf32>
      tpu.vector_store %arg3[%c0_100, %c0_101], %187 {strides = array<i32>} : memref<1x1xf32, #tpu.memory_space<vmem>>, vector<1x1xf32>,
    } else {
    }
    return
  }
  func.func @transform_0(%arg0: i32) -> (i32, i32) {
    %c0_i32 = arith.constant 0 : i32
    %c0_i32_0 = arith.constant 0 : i32
    return %arg0, %c0_i32 : i32, i32
  }
  func.func @transform_1(%arg0: i32) -> (i32, i32) {
    %c0_i32 = arith.constant 0 : i32
    %c0_i32_0 = arith.constant 0 : i32
    return %arg0, %c0_i32 : i32, i32
  }
  func.func @transform_2(%arg0: i32) -> (i32, i32) {
    %c0_i32 = arith.constant 0 : i32
    %c0_i32_0 = arith.constant 0 : i32
    %c0_i32_1 = arith.constant 0 : i32
    return %c0_i32, %c0_i32_0 : i32, i32
  }
}

</mosaic_0001>

<bundles_post_ra>
// kernel: tpu_custom_call.1
= control target key start
LH: loop header
LB: loop body
LE: loop exit
PB: predicated region body
PF: predicated region fallthrough
CT: control target
= control target key end

     0   :  { %7 = vsyncpa [#allocation12], 0  ;;  %s637_s0 = inlined_call_operand.hbm [shape: f32[8,128], index: 0, kind: input, shape index: {}]   ;;  %s638_s1 = inlined_call_operand.hbm [shape: f32[8,128], index: 1, kind: input, shape index: {}]   ;;  %s639_s2 = inlined_call_operand.hbm [shape: f32[1,1], index: 2, kind: output, shape index: {}]  }
   0x1   :  { %8 = vsyncpa [#allocation15], 0 }
   0x2   :  { %9 = vsyncpa [#allocation13], 0  ;;  %s415_s9 = smov [#allocation11]   ;;  %s416_s11 = smov [#allocation14]  }
   0x3   :  { %s16_s10 = sshll.u32 %s415_s9, 4  ;;  %s26_s12 = sshll.u32 %s416_s11, 4  ;;  %s17_s10 = int_to_ptr.vmem [resolvable:$true] %s16_s10  ;;  %s27_s12 = int_to_ptr.vmem [resolvable:$true] %s26_s12 }
   0x4   :  { %s343_s15 = scalar_lea.hbm %s637_s0, 128 }
   0x5   :  { %p344_p0 = scmp.ne.s32.totalorder %s637_s0, %s343_s15  ;;  %p347_p1 = scmp.lt.u32.totalorder %s343_s15, %s637_s0 }
   0x7   :  { %p349_p2 = pnand %p347_p1, %p344_p0 }
   0x9   :  { %352 = shalt.err (!%p349_p2)
}
   0xa   :  { %s353_s20 = scalar_lea.vmem %s17_s10, 128  ;;  %p358_p4 = scmp.lt.s32.totalorder %s17_s10, %s17_s10 }
   0xb   :  { %p354_p3 = scmp.ne.s32.totalorder %s17_s10, %s353_s20  ;;  %p359_p5 = scmp.lt.s32.totalorder %s353_s20, %s353_s20 }
   0xd   :  { %p360_p6 = por %p359_p5, %p358_p4 }
   0xf   :  { %p361_p7 = pnand %p360_p6, %p354_p3 }
  0x11   :  { %364 = shalt.err (!%p361_p7)
}
  0x12   :  { %19 = dma.hbm_to_vmem [thread:$0]  %s637_s0, 128, %s17_s10, [#allocation12]  }
  0x13   :  { %s365_s25 = scalar_lea.hbm %s638_s1, 128 }
  0x14   :  { %p366_p8 = scmp.ne.s32.totalorder %s638_s1, %s365_s25  ;;  %p369_p9 = scmp.lt.u32.totalorder %s365_s25, %s638_s1 }
  0x16   :  { %p371_p10 = pnand %p369_p9, %p366_p8 }
  0x18   :  { %374 = shalt.err (!%p371_p10)
}
  0x19   :  { %s375_s30 = scalar_lea.vmem %s27_s12, 128  ;;  %p380_p12 = scmp.lt.s32.totalorder %s27_s12, %s27_s12 }
  0x1a   :  { %p376_p11 = scmp.ne.s32.totalorder %s27_s12, %s375_s30  ;;  %p381_p13 = scmp.lt.s32.totalorder %s375_s30, %s375_s30 }
  0x1c   :  { %p382_p0 = por %p381_p13, %p380_p12 }
  0x1e   :  { %p383_p1 = pnand %p382_p0, %p376_p11 }
  0x20   :  { %386 = shalt.err (!%p383_p1)
}
  0x21   :  { %29 = dma.hbm_to_vmem [thread:$0]  %s638_s1, 128, %s27_s12, [#allocation15]  }
  0x22   :  { %409 = dma.done.wait [#allocation12], 128  }
  0x23   :  { %410 = vsyncadd [#allocation12], 4294967168 }
  0x24   :  { %411 = dma.done.wait [#allocation15], 128  }
  0x25   :  { %412 = vsyncadd [#allocation15], 4294967168  ;;  %v38_v0 = vlaneseq  ;;  %v462_v5 = vld [vmem:[#allocation11] sm:$0xff]  ;;  %vm48_vm1 = vcmask 0   ;;  %v417_v19 = vmov -inf   ;;  %v418_v20 = vmov inf  }
  0x26   :  { %v78_v6 = vrot.slane %v462_v5, 4  ;;  %50 = vst.msk [vmem:[#allocation3] sm:$0x1] %vm48_vm1, %v417_v19  ;;  %51 = vst.msk [vmem:[#allocation5] sm:$0x1] %vm48_vm1, %v417_v19  ;;  %s420_s1 = smov [#allocation16]  }
  0x27   :  { %v39_v1 = vshrl.u32 %v38_v0, 7  ;;  %v41_v2 = vand.u32 127, %v38_v0  ;;  %52 = vst.msk [vmem:[#allocation7] sm:$0x1] %vm48_vm1, %v418_v20  ;;  %53 = vst.msk [vmem:[#allocation9] sm:$0x1] %vm48_vm1, %v418_v20 }
  0x28   :  { %v79_v8 = vmax.f32 %v462_v5, %v78_v6  ;;  %s327_s4 = sshll.u32 %s420_s1, 4  ;;  %s328_s4 = int_to_ptr.vmem [resolvable:$true] %s327_s4 }
  0x29   :  { %v42_v3 = vmul.u32 128, %v39_v1  ;;  %s387_s5 = scalar_lea.vmem %s328_s4, 16  ;;  %s391_s6 = scalar_lea.vmem %s328_s4, 32 }
  0x2a   :  { %v80_v10 = vrot.slane %v79_v8, 2  ;;  %p388_p2 = scmp.ne.s32.totalorder %s328_s4, %s387_s5  ;;  %p392_p3 = scmp.lt.s32.totalorder %s328_s4, %s328_s4 }
  0x2b   :  { %v460_v4 = vadd.s32 %v42_v3, %v41_v2  ;;  %p393_p4 = scmp.lt.s32.totalorder %s391_s6, %s387_s5 }
  0x2c   :  { %v81_v12 = vmax.f32 %v79_v8, %v80_v10 }
  0x2d   :  { %vm61_vm0 = vcmp.lt.s32.totalorder %v460_v4, 8  ;;  %v478_v21 = vld [vmem:[#allocation3] sm:$0x1]  ;;  %p394_p5 = por %p393_p4, %p392_p3 }
  0x2e   :  { %v469_v7 = vsel %vm61_vm0, %v462_v5, inf  ;;  %v82_v14 = vrot.slane %v81_v12, 1  ;;  %v487_v24 = vld [vmem:[#allocation7] sm:$0x1] }
  0x2f   :  { %v147_v9 = vrot.slane %v469_v7, 4  ;;  %p395_p6 = pnand %p394_p5, %p388_p2 }
  0x30   :  { %v83_v16 = vmax.f32 %v81_v12, %v82_v14 }
  0x31   :  { %v148_v11 = vmin.f32 %v469_v7, %v147_v9 }
  0x32   :  { %84 = vmax.xlane.f32.xlu0 %v83_v16  ;;  %v524_v16 = vld [vmem:[#allocation5] sm:$0x1] }
  0x33   :  { %v149_v13 = vrot.slane %v148_v11, 2 }
  0x35   :  { %v150_v15 = vmin.f32 %v148_v11, %v149_v13 }
  0x37   :  { %v151_v17 = vrot.slane %v150_v15, 1 }
  0x39   :  { %v152_v18 = vmin.f32 %v150_v15, %v151_v17 }
  0x3b   :  { %153 = vmin.xlane.f32.xlu0 %v152_v18 }
  0xbf   :  { %v480_v22 = vpop.xlane.xlu0 %84 }
  0xc0   :  { %vm86_vm2 = vcmp.eq.f32.partialorder %v462_v5, %v480_v22  ;;  %vm256_vm3 = vcmp.ge.f32.partialorder %v478_v21, %v480_v22 }
  0xc1   :  { %v87_v23 = vsel %vm86_vm2, %v460_v4, 1024  ;;  %v257_v25 = vsel %vm256_vm3, %v478_v21, %v480_v22  ;;  %vm259_vm2 = vcmp.ge.f32.partialorder %v524_v16, %v480_v22 }
  0xc2   :  { %v88_v26 = vrot.slane %v87_v23, 4  ;;  %265 = vst.msk [vmem:[#allocation3] sm:$0x1] %vm48_vm1, %v257_v25  ;;  %v260_v20 = vsel %vm259_vm2, %v524_v16, %v480_v22 }
  0xc4   :  { %vm89_vm5 = vcmp.lt.s32.totalorder %v87_v23, %v88_v26 }
  0xc5   :  { %v90_v29 = vsel %vm89_vm5, %v87_v23, %v88_v26 }
  0xc6   :  { %v91_v31 = vrot.slane %v90_v29, 2 }
  0xc8   :  { %v495_v27 = vpop.xlane.xlu0 %153  ;;  %vm92_vm7 = vcmp.lt.s32.totalorder %v90_v29, %v91_v31 }
  0xc9   :  { %vm155_vm4 = vcmp.eq.f32.partialorder %v469_v7, %v495_v27  ;;  %vm275_vm6 = vcmp.le.f32.partialorder %v495_v27, %v487_v24  ;;  %v93_v33 = vsel %vm92_vm7, %v90_v29, %v91_v31 }
  0xca   :  { %v156_v28 = vsel %vm155_vm4, %v460_v4, 4294967295  ;;  %v276_v30 = vsel %vm275_vm6, %v495_v27, %v487_v24  ;;  %v94_v35 = vrot.slane %v93_v33, 1 }
  0xcb   :  { %v157_v32 = vrot.slane %v156_v28, 4  ;;  %284 = vst.msk [vmem:[#allocation7] sm:$0x1] %vm48_vm1, %v276_v30 }
  0xcc   :  { %vm95_vm9 = vcmp.lt.s32.totalorder %v93_v33, %v94_v35 }
  0xcd   :  { %vm158_vm8 = vcmp.gt.s32.totalorder %v156_v28, %v157_v32  ;;  %v96_v37 = vsel %vm95_vm9, %v93_v33, %v94_v35 }
  0xce   :  { %v159_v34 = vsel %vm158_vm8, %v156_v28, %v157_v32  ;;  %v98_v39 = vshra.s32 %v96_v37, 16  ;;  %v97_v45 = vand.u32 65535, %v96_v37 }
  0xcf   :  { %v160_v36 = vrot.slane %v159_v34, 2 }
  0xd0   :  { %v100_v41 = vcvt.s32.f32 %v98_v39  ;;  %v99_v47 = vcvt.s32.f32 %v97_v45 }
  0xd1   :  { %vm161_vm10 = vcmp.gt.s32.totalorder %v159_v34, %v160_v36 }
  0xd2   :  { %v162_v38 = vsel %vm161_vm10, %v159_v34, %v160_v36  ;;  %101 = vmin.xlane.f32.xlu1 %v100_v41 }
  0xd3   :  { %v163_v40 = vrot.slane %v162_v38, 1 }
  0xd5   :  { %vm164_vm11 = vcmp.gt.s32.totalorder %v162_v38, %v163_v40 }
  0xd6   :  { %v165_v42 = vsel %vm164_vm11, %v162_v38, %v163_v40 }
  0xd7   :  { %v167_v43 = vshra.s32 %v165_v42, 16  ;;  %v166_v48 = vand.u32 65535, %v165_v42 }
  0xd9   :  { %v169_v44 = vcvt.s32.f32 %v167_v43  ;;  %v168_v51 = vcvt.s32.f32 %v166_v48 }
  0xdb   :  { %170 = vmax.xlane.f32.xlu1 %v169_v44 }
 0x15f   :  { %v102_v46 = vpop.xlane.xlu1 %101 }
 0x160   :  { %vm103_vm12 = vcmp.eq.f32.partialorder %v100_v41, %v102_v46  ;;  %v108_v53 = vcvt.f32.s32 %v102_v46 }
 0x161   :  { %v104_v49 = vsel %vm103_vm12, %v99_v47, inf  ;;  %v572_v47 = vld [vmem:[#allocation14] sm:$0xff] }
 0x162   :  { %105 = vmin.xlane.f32.xlu0 %v104_v49  ;;  %v109_v55 = vshll.u32 %v108_v53, 16 }
 0x168   :  { %v171_v50 = vpop.xlane.xlu1 %170 }
 0x169   :  { %vm172_vm13 = vcmp.eq.f32.partialorder %v169_v44, %v171_v50  ;;  %v177_v56 = vcvt.f32.s32 %v171_v50 }
 0x16a   :  { %v173_v52 = vsel %vm172_vm13, %v168_v51, -inf }
 0x16b   :  { %174 = vmax.xlane.f32.xlu1 %v173_v52  ;;  %v178_v60 = vshll.u32 %v177_v56, 16 }
 0x1ef   :  { %v106_v54 = vpop.xlane.xlu0 %105 }
 0x1f0   :  { %v107_v57 = vcvt.f32.s32 %v106_v54 }
 0x1f2   :  { %v508_v58 = vadd.s32 %v109_v55, %v107_v57 }
 0x1f4   :  { %vm111_vm14 = vcmp.eq.s32.totalorder %v460_v4, %v508_v58 }
 0x1f5   :  { %v112_v62 = vsel %vm111_vm14, -inf, %v462_v5  ;;  %v216_v48 = vsel %vm111_vm14, %v572_v47, 0.0 }
 0x1f6   :  { %v113_v0 = vrot.slane %v112_v62, 4  ;;  %v217_v49 = vrot.slane %v216_v48, 4 }
 0x1f8   :  { %v175_v59 = vpop.xlane.xlu1 %174  ;;  %v114_v1 = vmax.f32 %v112_v62, %v113_v0  ;;  %v218_v52 = vadd.f32 %v217_v49, %v216_v48 }
 0x1f9   :  { %v176_v61 = vcvt.f32.s32 %v175_v59 }
 0x1fa   :  { %v115_v3 = vrot.slane %v114_v1, 2  ;;  %v219_v53 = vrot.slane %v218_v52, 2 }
 0x1fb   :  { %v516_v63 = vadd.s32 %v178_v60, %v176_v61 }
 0x1fc   :  { %v116_v8 = vmax.f32 %v114_v1, %v115_v3  ;;  %v220_v56 = vadd.f32 %v219_v53, %v218_v52 }
 0x1fd   :  { %vm180_vm15 = vcmp.eq.s32.totalorder %v460_v4, %v516_v63 }
 0x1fe   :  { %v181_v2 = vsel %vm180_vm15, inf, %v469_v7  ;;  %v117_v10 = vrot.slane %v116_v8, 1  ;;  %v530_v7 = vld [vmem:[#allocation9] sm:$0x1]  ;;  %v234_v50 = vsel %vm180_vm15, %v572_v47, 0.0 }
 0x1ff   :  { %v182_v6 = vrot.slane %v181_v2, 4  ;;  %vm281_vm7 = vcmp.le.f32.partialorder %v495_v27, %v530_v7  ;;  %v235_v51 = vrot.slane %v234_v50, 4 }
 0x200   :  { %v118_v12 = vmax.f32 %v116_v8, %v117_v10  ;;  %v282_v31 = vsel %vm281_vm7, %v495_v27, %v530_v7  ;;  %v62_v10 = vsub.f32 %v462_v5, %v572_v47 }
 0x201   :  { %v183_v9 = vmin.f32 %v181_v2, %v182_v6  ;;  %v236_v54 = vadd.f32 %v235_v51, %v234_v50 }
 0x202   :  { %119 = vmax.xlane.f32.xlu0 %v118_v12 }
 0x203   :  { %v184_v11 = vrot.slane %v183_v9, 2  ;;  %v237_v57 = vrot.slane %v236_v54, 2 }
 0x205   :  { %v185_v13 = vmin.f32 %v183_v9, %v184_v11  ;;  %v238_v58 = vadd.f32 %v237_v57, %v236_v54  ;;  %v419_v9 = vmov 0.0   ;;  %v63_v11 = vand.u32 2147483647, %v62_v10 }
 0x206   :  { %54 = vst.msk [vmem:[#allocation4] sm:$0x1] %vm48_vm1, %v419_v9  ;;  %55 = vst.msk [vmem:[#allocation6] sm:$0x1] %vm48_vm1, %v419_v9 }
 0x207   :  { %v186_v14 = vrot.slane %v185_v13, 1  ;;  %v239_v3 = vrot.slane %v238_v58, 1  ;;  %57 = vst.msk [vmem:[#allocation10] sm:$0x1] %vm48_vm1, %v419_v9  ;;  %49 = vst.msk [vmem:[#allocation2] sm:$0x1] %vm48_vm1, %v419_v9 }
 0x208   :  { %56 = vst.msk [vmem:[#allocation8] sm:$0x1] %vm48_vm1, %v419_v9  ;;  %v64_v12 = vsel %vm61_vm0, %v63_v11, 0.0 }
 0x209   :  { %v187_v15 = vmin.f32 %v185_v13, %v186_v14  ;;  %v240_v8 = vadd.f32 %v239_v3, %v238_v58  ;;  %v67_v13 = vrot.slane %v64_v12, 4 }
 0x20b   :  { %188 = vmin.xlane.f32.xlu1 %v187_v15  ;;  %v68_v14 = vadd.f32 %v67_v13, %v64_v12 }
 0x20d   :  { %v69_v15 = vrot.slane %v68_v14, 2 }
 0x28f   :  { %v528_v17 = vpop.xlane.xlu0 %119 }
 0x290   :  { %vm121_vm4 = vcmp.eq.f32.partialorder %v112_v62, %v528_v17  ;;  %vm262_vm5 = vcmp.ge.f32.partialorder %v478_v21, %v528_v17  ;;  %v221_v62 = vrot.slane %v220_v56, 1 }
 0x291   :  { %v122_v18 = vsel %vm121_vm4, %v460_v4, 1024  ;;  %v263_v19 = vsel %vm262_vm5, %v478_v21, %v528_v17 }
 0x292   :  { %v123_v23 = vrot.slane %v122_v18, 4  ;;  %v267_v25 = vsel %vm256_vm3, %v260_v20, %v263_v19  ;;  %v222_v63 = vadd.f32 %v221_v62, %v220_v56  ;;  %v274_v62 = vld [vmem:[#allocation10] sm:$0x1] }
 0x293   :  { %268 = vst.msk [vmem:[#allocation5] sm:$0x1] %vm48_vm1, %v267_v25 }
 0x294   :  { %vm124_vm8 = vcmp.lt.s32.totalorder %v122_v18, %v123_v23 }
 0x295   :  { %v125_v28 = vsel %vm124_vm8, %v122_v18, %v123_v23  ;;  %v70_v18 = vadd.f32 %v69_v15, %v68_v14 }
 0x296   :  { %v126_v32 = vrot.slane %v125_v28, 2 }
 0x297   :  { %v71_v19 = vrot.slane %v70_v18, 1 }
 0x298   :  { %v551_v26 = vpop.xlane.xlu1 %188  ;;  %vm127_vm12 = vcmp.lt.s32.totalorder %v125_v28, %v126_v32 }
 0x299   :  { %vm190_vm9 = vcmp.eq.f32.partialorder %v181_v2, %v551_v26  ;;  %vm278_vm10 = vcmp.le.f32.partialorder %v551_v26, %v487_v24  ;;  %v128_v36 = vsel %vm127_vm12, %v125_v28, %v126_v32  ;;  %v72_v20 = vadd.f32 %v71_v19, %v70_v18 }
 0x29a   :  { %v191_v29 = vsel %vm190_vm9, %v460_v4, 4294967295  ;;  %v279_v30 = vsel %vm278_vm10, %v551_v26, %v487_v24  ;;  %v129_v38 = vrot.slane %v128_v36, 1 }
 0x29b   :  { %v192_v33 = vrot.slane %v191_v29, 4  ;;  %v286_v34 = vsel %vm275_vm6, %v279_v30, %v282_v31  ;;  %v253_v31 = vld [vmem:[#allocation4] sm:$0x1] }
 0x29c   :  { %287 = vst.msk [vmem:[#allocation9] sm:$0x1] %vm48_vm1, %v286_v34  ;;  %vm130_vm13 = vcmp.lt.s32.totalorder %v128_v36, %v129_v38 }
 0x29d   :  { %vm193_vm11 = vcmp.gt.s32.totalorder %v191_v29, %v192_v33  ;;  %v131_v39 = vsel %vm130_vm13, %v128_v36, %v129_v38  ;;  %v272_v38 = vld [vmem:[#allocation8] sm:$0x1] }
 0x29e   :  { %v194_v35 = vsel %vm193_vm11, %v191_v29, %v192_v33  ;;  %v133_v41 = vshra.s32 %v131_v39, 16  ;;  %v132_v55 = vand.u32 65535, %v131_v39 }
 0x29f   :  { %v195_v37 = vrot.slane %v194_v35, 2 }
 0x2a0   :  { %v135_v43 = vcvt.s32.f32 %v133_v41  ;;  %v134_v60 = vcvt.s32.f32 %v132_v55  ;;  %v66_v55 = vld [vmem:[#allocation2] sm:$0x1] }
 0x2a1   :  { %vm196_vm4 = vcmp.gt.s32.totalorder %v194_v35, %v195_v37 }
 0x2a2   :  { %v197_v40 = vsel %vm196_vm4, %v194_v35, %v195_v37  ;;  %136 = vmin.xlane.f32.xlu0 %v135_v43 }
 0x2a3   :  { %v198_v42 = vrot.slane %v197_v40, 1  ;;  %v298_v3 = vld [vmem:[#allocation9] sm:$0x1] }
 0x2a5   :  { %vm199_vm8 = vcmp.gt.s32.totalorder %v197_v40, %v198_v42 }
 0x2a6   :  { %v200_v44 = vsel %vm199_vm8, %v197_v40, %v198_v42 }
 0x2a7   :  { %v202_v45 = vshra.s32 %v200_v44, 16  ;;  %v201_v61 = vand.u32 65535, %v200_v44 }
 0x2a9   :  { %v204_v46 = vcvt.s32.f32 %v202_v45  ;;  %v203_v2 = vcvt.s32.f32 %v201_v61 }
 0x2ab   :  { %205 = vmax.xlane.f32.xlu1 %v204_v46 }
 0x32f   :  { %v137_v59 = vpop.xlane.xlu0 %136 }
 0x330   :  { %vm138_vm9 = vcmp.eq.f32.partialorder %v135_v43, %v137_v59  ;;  %v143_v23 = vcvt.f32.s32 %v137_v59 }
 0x331   :  { %v139_v0 = vsel %vm138_vm9, %v134_v60, inf }
 0x332   :  { %140 = vmin.xlane.f32.xlu0 %v139_v0  ;;  %v144_v28 = vshll.u32 %v143_v23, 16  ;;  %v296_v0 = vld [vmem:[#allocation5] sm:$0x1] }
 0x336   :  { %223 = vadd.xlane.f32.xlu0 %v222_v63  ;;  %v297_v63 = vld [vmem:[#allocation7] sm:$0x1] }
 0x338   :  { %v206_v1 = vpop.xlane.xlu1 %205 }
 0x339   :  { %vm207_vm14 = vcmp.eq.f32.partialorder %v204_v46, %v206_v1  ;;  %v212_v29 = vcvt.f32.s32 %v206_v1 }
 0x33a   :  { %v208_v6 = vsel %vm207_vm14, %v203_v2, -inf  ;;  %241 = vadd.xlane.f32.xlu0 %v240_v8  ;;  %v295_v2 = vld [vmem:[#allocation3] sm:$0x1]  ;;  %v311_v8 = vsub.f32 %v298_v3, %v297_v63 }
 0x33b   :  { %209 = vmax.xlane.f32.xlu1 %v208_v6  ;;  %v213_v34 = vshll.u32 %v212_v29, 16  ;;  %v305_v6 = vsub.f32 %v295_v2, %v296_v0  ;;  %v303_v22 = vsub.f32 %v295_v2, %v297_v63 }
 0x33c   :  { %v312_v7 = vand.u32 2147483647, %v311_v8 }
 0x33d   :  { %v306_v9 = vand.u32 2147483647, %v305_v6  ;;  %v304_v12 = vand.u32 2147483647, %v303_v22 }
 0x33e   :  { %73 = vadd.xlane.f32.xlu0 %v72_v20 }
 0x33f   :  { %v307_v14 = vsub.f32 %v306_v9, %v304_v12  ;;  %v313_v19 = vsub.f32 %v312_v7, %v304_v12 }
 0x3bf   :  { %v141_v25 = vpop.xlane.xlu0 %140 }
 0x3c0   :  { %v142_v30 = vcvt.f32.s32 %v141_v25 }
 0x3c2   :  { %v145_v32 = vadd.s32 %v144_v28, %v142_v30 }
 0x3c3   :  { %v224_v5 = vpop.xlane.xlu0 %223 }
 0x3c4   :  { %vm146_vm15 = vcmp.eq.s32.totalorder %v460_v4, %v145_v32  ;;  %v258_v36 = vsel %vm256_vm3, %v253_v31, %v224_v5 }
 0x3c5   :  { %v225_v37 = vsel %vm146_vm15, %v572_v47, 0.0  ;;  %266 = vst.msk [vmem:[#allocation4] sm:$0x1] %vm48_vm1, %v258_v36 }
 0x3c6   :  { %v226_v39 = vrot.slane %v225_v37, 4 }
 0x3c7   :  { %v242_v41 = vpop.xlane.xlu0 %241 }
 0x3c8   :  { %v210_v33 = vpop.xlane.xlu1 %209  ;;  %v277_v42 = vsel %vm275_vm6, %v242_v41, %v272_v38  ;;  %v227_v43 = vadd.f32 %v226_v39, %v225_v37  ;;  %v283_v16 = vsel %vm281_vm7, %v242_v41, %v274_v62 }
 0x3c9   :  { %v211_v35 = vcvt.f32.s32 %v210_v33  ;;  %285 = vst.msk [vmem:[#allocation8] sm:$0x1] %vm48_vm1, %v277_v42 }
 0x3ca   :  { %v228_v46 = vrot.slane %v227_v43, 2 }
 0x3cb   :  { %v214_v40 = vadd.s32 %v213_v34, %v211_v35  ;;  %v74_v56 = vpop.xlane.xlu0 %73 }
 0x3cc   :  { %v229_v48 = vadd.f32 %v228_v46, %v227_v43  ;;  %v75_v57 = vadd.f32 %v74_v56, %v66_v55  ;;  %v299_v15 = vld [vmem:[#allocation4] sm:$0x1] }
 0x3cd   :  { %vm215_vm0 = vcmp.eq.s32.totalorder %v460_v4, %v214_v40 }
 0x3ce   :  { %v243_v44 = vsel %vm215_vm0, %v572_v47, 0.0  ;;  %v230_v50 = vrot.slane %v229_v48, 1  ;;  %77 = vst.msk [vmem:[#allocation2] sm:$0x1] %vm48_vm1, %v75_v57  ;;  %v255_v47 = vld [vmem:[#allocation6] sm:$0x1] }
 0x3cf   :  { %v244_v45 = vrot.slane %v243_v44, 4  ;;  %v261_v60 = vsel %vm259_vm2, %v255_v47, %v224_v5 }
 0x3d0   :  { %v231_v52 = vadd.f32 %v230_v50, %v229_v48  ;;  %v301_v11 = vld [vmem:[#allocation8] sm:$0x1] }
 0x3d1   :  { %v245_v49 = vadd.f32 %v244_v45, %v243_v44 }
 0x3d2   :  { %232 = vadd.xlane.f32.xlu1 %v231_v52 }
 0x3d3   :  { %v246_v51 = vrot.slane %v245_v49, 2 }
 0x3d5   :  { %v247_v53 = vadd.f32 %v246_v51, %v245_v49  ;;  %v293_v25 = vld [vmem:[#allocation2] sm:$0x1] }
 0x3d6   :  { %v294_v28 = vmul.f32 0.125, %v293_v25 }
 0x3d7   :  { %v248_v54 = vrot.slane %v247_v53, 1 }
 0x3d9   :  { %v249_v4 = vadd.f32 %v248_v54, %v247_v53 }
 0x3db   :  { %250 = vadd.xlane.f32.xlu1 %v249_v4 }
 0x45f   :  { %v233_v59 = vpop.xlane.xlu1 %232 }
 0x460   :  { %v264_v61 = vsel %vm262_vm5, %v253_v31, %v233_v59 }
 0x461   :  { %v269_v58 = vsel %vm256_vm3, %v261_v60, %v264_v61 }
 0x462   :  { %270 = vst.msk [vmem:[#allocation6] sm:$0x1] %vm48_vm1, %v269_v58 }
 0x468   :  { %v251_v1 = vpop.xlane.xlu1 %250 }
 0x469   :  { %v280_v17 = vsel %vm278_vm10, %v251_v1, %v272_v38  ;;  %v300_v10 = vld [vmem:[#allocation6] sm:$0x1] }
 0x46a   :  { %v288_v21 = vsel %vm275_vm6, %v280_v17, %v283_v16  ;;  %v308_v13 = vsub.f32 %v300_v10, %v301_v11 }
 0x46b   :  { %289 = vst.msk [vmem:[#allocation10] sm:$0x1] %vm48_vm1, %v288_v21 }
 0x46c   :  { %v309_v26 = vadd.f32 %v308_v13, %v307_v14 }
 0x46e   :  { %v310_v24 = vmax.f32 %v309_v26, 0.0 }
 0x472   :  { %v302_v18 = vld [vmem:[#allocation10] sm:$0x1] }
 0x473   :  { %v314_v20 = vsub.f32 %v299_v15, %v302_v18 }
 0x475   :  { %v315_v23 = vadd.f32 %v314_v20, %v313_v19 }
 0x477   :  { %v316_v27 = vmax.f32 %v315_v23, 0.0 }
 0x479   :  { %v317_v29 = vadd.f32 %v316_v27, %v310_v24 }
 0x47b   :  { %v318_v30 = vmul.f32 0.5, %v317_v29 }
 0x47d   :  { %v319_v31 = vadd.f32 %v318_v30, %v294_v28 }
 0x47f   :  { %320 = vst.msk [vmem:[#allocation16] sm:$0x1] %vm48_vm1, %v319_v31 }
 0x480   :  { %398 = shalt.err (!%p395_p6)
}
 0x481   :  { %s399_s9 = scalar_lea.hbm %s639_s2, 16 }
 0x482   :  { %p400_p7 = scmp.ne.s32.totalorder %s639_s2, %s399_s9  ;;  %p403_p8 = scmp.lt.u32.totalorder %s399_s9, %s639_s2 }
 0x484   :  { %p405_p9 = pnand %p403_p8, %p400_p7 }
 0x486   :  { %408 = shalt.err (!%p405_p9)
}
 0x487   :  { %330 = dma.vmem_to_hbm [thread:$0]  %s328_s4, 16, %s639_s2, [#allocation13]  }
 0x488   :  { %413 = dma.done.wait [#allocation13], 16  }
 0x489   :  { %414 = vsyncadd [#allocation13], 4294967280 }
 0x48a   :  { %334 = vsyncpa [#allocation12], 1 }
 0x48b   :  { %335 = vsyncpa [#allocation15], 1 }
 0x48c   :  { %336 = vsyncpa [#allocation13], 1 }

</bundles_post_ra>
